<compile_context>
chip_gen: v7x
topology: tpu7x:2x2x1
jax: 0.10.0
libtpu: 0.0.40
codegen_flags: <defaults>
</compile_context>

<pallas_src>
from typing import NamedTuple

import jax
import jax.numpy as jnp
from jax.experimental import pallas as pl
from jax.experimental.pallas import tpu as pltpu


def _round_up(x, m):
    return (x + m - 1) // m * m


def _sublane(dtype):
    # 32-bit dtypes tile (8,128); packed dtypes need 16 (bf16) / 32 (int8/fp8).
    return max(8, 32 // jnp.dtype(dtype).itemsize)


def _tpu_vmem_capacity_bytes():
    try:
        info = pltpu.get_tpu_info()
        cap = getattr(info, "vmem_capacity_bytes", None)
        if cap:
            return int(cap)
    except Exception:
        pass
    return 64 * 2**20  # conservative default (v7x per-TC VMEM)


def _num_tensorcores():
    try:
        info = pltpu.get_tpu_info()
        for name in ("num_tensorcores", "tensorcores_per_chip", "num_cores",
                     "core_count"):
            v = getattr(info, name, None)
            if isinstance(v, int) and v > 0:
                return min(v, 2)
    except Exception:
        pass
    try:
        if "v7" in jax.devices()[0].device_kind.lower():
            return 2
    except Exception:
        pass
    return 1


class SplitParams(NamedTuple):
    w_blk: jax.Array   # (D, Hp) block-diagonal weight, compute dtype
    b_blk: jax.Array   # (1, Hp) f32 bias
    h1: int
    h2: int
    split_idx: int


def prepare_split_linear(w1, b1, w2, b2, *, split_idx, compute_dtype=None,
                         pad_lanes=None):
    """Build (once per weight set) the fused block-diagonal weight/bias.

    Callers should cache the returned params across forward passes — the pad
    is pure data movement that never changes.
    """
    d1, h1 = w1.shape
    d2, h2 = w2.shape
    assert d1 == split_idx, "module1 input dim must equal split_idx"
    D, H = d1 + d2, h1 + h2
    compute_dtype = jnp.dtype(compute_dtype if compute_dtype is not None
                              else w1.dtype)

    if pad_lanes is None:
        # Pad the output lanes only if the extra write traffic is <= 25%;
        # otherwise rely on masked stores (last dim == full array dim is legal).
        Hp_full = _round_up(H, 128)
        pad_lanes = (Hp_full - H) * 4 <= H
    Hp = _round_up(H, 128) if pad_lanes else H

    w_blk = jnp.zeros((D, Hp), dtype=compute_dtype)
    w_blk = w_blk.at[:d1, :h1].set(w1.astype(compute_dtype))
    w_blk = w_blk.at[d1:, h1:H].set(w2.astype(compute_dtype))
    b_blk = jnp.zeros((1, Hp), dtype=jnp.float32)
    b_blk = b_blk.at[0, :h1].set(b1.astype(jnp.float32))
    b_blk = b_blk.at[0, h1:H].set(b2.astype(jnp.float32))
    return SplitParams(w_blk=w_blk, b_blk=b_blk, h1=h1, h2=h2,
                       split_idx=split_idx)


def _split_linear_kernel(x_ref, w_ref, b_ref, o_ref):
    # In-kernel cast (bf16 path): avoids a separate host pass over x.
    x = x_ref[...].astype(w_ref.dtype)
    acc = jnp.dot(x, w_ref[...], preferred_element_type=jnp.float32)
    o_ref[...] = (acc + b_ref[...]).astype(o_ref.dtype)


def _split_linear_ktiled_kernel(x_ref, w_ref, b_ref, o_ref, acc_ref):
    k = pl.program_id(1)

    @pl.when(k == 0)
    def _():
        acc_ref[...] = jnp.zeros_like(acc_ref)

    x = x_ref[...].astype(w_ref.dtype)
    acc_ref[...] += jnp.dot(x, w_ref[...], preferred_element_type=jnp.float32)

    @pl.when(k == pl.num_programs(1) - 1)
    def _():
        o_ref[...] = (acc_ref[...] + b_ref[...]).astype(o_ref.dtype)


def split_forward(x, params, *, block_b=None, block_k=None,
                  force_k_tiling=False, out_dtype=None):
    """Pallas forward for Split(Linear, Linear, split_idx)."""
    B, D = x.shape
    w_blk, b_blk = params.w_blk, params.b_blk
    Dw, Hp = w_blk.shape
    assert Dw == D, "x feature dim must equal module1+module2 input dims"
    h1, h2 = params.h1, params.h2

    out_dtype = jnp.dtype(out_dtype if out_dtype is not None else x.dtype)
    x_item = jnp.dtype(x.dtype).itemsize
    w_item = jnp.dtype(w_blk.dtype).itemsize
    o_item = out_dtype.itemsize

    vmem_cap = _tpu_vmem_capacity_bytes()
    num_tc = _num_tensorcores()
    sublane = max(_sublane(x.dtype), _sublane(out_dtype))

    # ---- Batch tile: as big as the VMEM budget allows (amortizes the
    # ~0.35 us/grid-step overhead); clamp on 2-TC chips so both cores get work.
    if block_b is None:
        per_row = 2 * (D * x_item + Hp * o_item)    # double-buffered bytes/row
        block_b = max(sublane, (vmem_cap // 4) // max(per_row, 1))
        block_b = min(block_b, 4096)
    block_b = min(block_b, B)
    if num_tc > 1 and B >= 2 * sublane:
        block_b = min(block_b, _round_up(-(-B // num_tc), sublane))
    if block_b != B:
        block_b = max(sublane, (block_b // sublane) * sublane)
    grid_b = -(-B // block_b)

    # ---- Resident-weight fast path vs K-tiled large-weight fallback.
    w_bytes = D * Hp * w_item
    use_k = force_k_tiling or (w_bytes > vmem_cap // 4)
    if use_k:
        if block_k is None:
            block_k = next((c for c in (1024, 512, 256, 128)
                            if c < D and D % c == 0), None)
        if (block_k is None or block_k % 128 != 0 or block_k >= D
                or D % block_k != 0):
            use_k = False   # no legal K tile; keep the resident-weight path

    flops = 2 * B * D * Hp
    bytes_accessed = (B * D * x_item + w_bytes + Hp * 4 + B * Hp * o_item)
    cost = pl.CostEstimate(flops=flops, transcendentals=0,
                           bytes_accessed=bytes_accessed)
    cap = min(48 * 2**20, vmem_cap * 5 // 8)   # stay well under v7x 64 MiB/TC

    if not use_k:
        x_tile = block_b * D * x_item
        o_tile = block_b * Hp * o_item

        def run(resident_mode):
            kw = {} if resident_mode is None else {"pipeline_mode": resident_mode}
            n_wbuf = 2 if resident_mode is None else 1
            needed = (2 * (x_tile + o_tile) + n_wbuf * D * Hp * w_item
                      + 2 * Hp * 4)
            vmem_limit = int(max(min(max(needed * 5 // 4, 16 * 2**20), cap),
                                 needed))
            return pl.pallas_call(
                _split_linear_kernel,
                out_shape=jax.ShapeDtypeStruct((B, Hp), out_dtype),
                grid=(grid_b,),
                in_specs=[
                    pl.BlockSpec((block_b, D), lambda i: (i, 0)),     # streamed
                    pl.BlockSpec((D, Hp), lambda i: (0, 0), **kw),    # resident
                    pl.BlockSpec((1, Hp), lambda i: (0, 0), **kw),    # resident
                ],
                out_specs=pl.BlockSpec((block_b, Hp), lambda i: (i, 0)),
                compiler_params=pltpu.CompilerParams(
                    dimension_semantics=("parallel",),
                    vmem_limit_bytes=vmem_limit,
                ),
                cost_estimate=cost,
            )(x, w_blk, b_blk)

        try:
            # Constant index_map -> single-buffer the resident weight/bias.
            out = run(pl.Buffered(1))
        except Exception:
            out = run(None)   # fallback if Buffered(1) is unsupported
    else:
        grid_k = D // block_k
        needed = (2 * (block_b * block_k * x_item + block_b * Hp * o_item
                       + block_k * Hp * w_item) + 2 * Hp * 4
                  + block_b * Hp * 4)
        vmem_limit = int(max(min(max(needed * 5 // 4, 16 * 2**20), cap), needed))
        out = pl.pallas_call(
            _split_linear_ktiled_kernel,
            out_shape=jax.ShapeDtypeStruct((B, Hp), out_dtype),
            grid=(grid_b, grid_k),
            in_specs=[
                pl.BlockSpec((block_b, block_k), lambda i, k: (i, k)),
                pl.BlockSpec((block_k, Hp), lambda i, k: (k, 0)),
                pl.BlockSpec((1, Hp), lambda i, k: (0, 0)),
            ],
            out_specs=pl.BlockSpec((block_b, Hp), lambda i, k: (i, 0)),
            scratch_shapes=[pltpu.VMEM((block_b, Hp), jnp.float32)],
            compiler_params=pltpu.CompilerParams(
                dimension_semantics=("parallel", "arbitrary"),
                vmem_limit_bytes=vmem_limit,
            ),
            cost_estimate=cost,
        )(x, w_blk, b_blk)

    # Undo the head concatenation (and any lane padding) outside the kernel.
    return out[:, :h1], out[:, h1:h1 + h2]


def split_linear_forward(x, w1, b1, w2, b2, *, split_idx, compute_dtype=None,
                         **kwargs):
    # Convenience one-shot wrapper; for loops, call prepare_split_linear()
    # once and reuse the params (the pad is cacheable).
    params = prepare_split_linear(w1, b1, w2, b2, split_idx=split_idx,
                                  compute_dtype=compute_dtype)
    return split_forward(x, params, **kwargs)


if __name__ == "__main__":
    # Canonical small shapes: batch=256, features=32, split_idx=16,
    # module1 = Linear(16 -> 24), module2 = Linear(16 -> 40).
    B, D = 256, 32
    split_idx = 16
    H1, H2 = 24, 40

    key = jax.random.PRNGKey(0)
    kx, kw1, kb1, kw2, kb2 = jax.random.split(key, 5)
    x = jax.random.normal(kx, (B, D), dtype=jnp.float32)
    w1 = jax.random.normal(kw1, (split_idx, H1), dtype=jnp.float32) * 0.1
    b1 = jax.random.normal(kb1, (H1,), dtype=jnp.float32) * 0.1
    w2 = jax.random.normal(kw2, (D - split_idx, H2), dtype=jnp.float32) * 0.1
    b2 = jax.random.normal(kb2, (H2,), dtype=jnp.float32) * 0.1

    # Pure-JAX reference of the PyTorch forward semantics.
    ref1 = x[:, :split_idx] @ w1 + b1
    ref2 = x[:, split_idx:] @ w2 + b2

    # f32 fast path (weights resident, one MXU matmul per batch tile).
    params_f32 = prepare_split_linear(w1, b1, w2, b2, split_idx=split_idx)
    out1, out2 = split_forward(x, params_f32)
    jax.block_until_ready((out1, out2))
    assert out1.shape == (B, H1) and out2.shape == (B, H2)
    assert jnp.allclose(out1, ref1, atol=1e-5, rtol=1e-5)
    assert jnp.allclose(out2, ref2, atol=1e-5, rtol=1e-5)

    # bf16 MXU path: x stays f32 in HBM, cast in-kernel; weights bf16.
    params_bf16 = prepare_split_linear(w1, b1, w2, b2, split_idx=split_idx,
                                       compute_dtype=jnp.bfloat16)
    o1b, o2b = split_forward(x, params_bf16)
    jax.block_until_ready((o1b, o2b))
    assert jnp.allclose(o1b.astype(jnp.float32), ref1, atol=5e-2, rtol=5e-2)
    assert jnp.allclose(o2b.astype(jnp.float32), ref2, atol=5e-2, rtol=5e-2)

    # Large-weight fallback: K-tiled reduction with an f32 VMEM accumulator.
    Bk, Dk, sk, H1k, H2k = 64, 256, 128, 40, 56
    kx2, kw3, kb3, kw4, kb4 = jax.random.split(jax.random.PRNGKey(1), 5)
    xk = jax.random.normal(kx2, (Bk, Dk), dtype=jnp.float32)
    w3 = jax.random.normal(kw3, (sk, H1k), dtype=jnp.float32) * 0.05
    b3 = jax.random.normal(kb3, (H1k,), dtype=jnp.float32) * 0.05
    w4 = jax.random.normal(kw4, (Dk - sk, H2k), dtype=jnp.float32) * 0.05
    b4 = jax.random.normal(kb4, (H2k,), dtype=jnp.float32) * 0.05
    refk1 = xk[:, :sk] @ w3 + b3
    refk2 = xk[:, sk:] @ w4 + b4
    params_k = prepare_split_linear(w3, b3, w4, b4, split_idx=sk)
    ok1, ok2 = split_forward(xk, params_k, force_k_tiling=True, block_k=128)
    jax.block_until_ready((ok1, ok2))
    assert jnp.allclose(ok1, refk1, atol=1e-4, rtol=1e-4)
    assert jnp.allclose(ok2, refk2, atol=1e-4, rtol=1e-4)

    print("KERNEL_OK")
</pallas_src>

<mosaic_0001>
module attributes {stable_mosaic.version = 11 : i64} {
  func.func @_split_linear_kernel(%arg0: i32, %arg1: memref<256x32xf32, #tpu.memory_space<vmem>>, %arg2: memref<32x64xf32, #tpu.memory_space<vmem>>, %arg3: memref<1x64xf32, #tpu.memory_space<vmem>>, %arg4: memref<256x64xf32, #tpu.memory_space<vmem>>) attributes {dimension_semantics = [#tpu.dimension_semantics<parallel>], iteration_bounds = array<i64: 1>, scalar_prefetch = 0 : i64, scratch_operands = 0 : i64, tpu.core_type = #tpu.core_type<tc>, window_params = [{transform_indices = @transform_0, window_bounds = array<i64: 256, 32>}, {pipeline_mode = #tpu.pipeline_mode<synchronous>, transform_indices = @transform_1, window_bounds = array<i64: 32, 64>}, {pipeline_mode = #tpu.pipeline_mode<synchronous>, transform_indices = @transform_2, window_bounds = array<i64: 1, 64>}, {transform_indices = @transform_3, window_bounds = array<i64: 256, 64>}]} {
    %c0 = arith.constant 0 : index
    %c0_0 = arith.constant 0 : index
    %0 = vector.load %arg1[%c0, %c0_0] : memref<256x32xf32, #tpu.memory_space<vmem>>, vector<256x32xf32>
    %c0_1 = arith.constant 0 : index
    %c0_2 = arith.constant 0 : index
    %1 = vector.load %arg2[%c0_1, %c0_2] : memref<32x64xf32, #tpu.memory_space<vmem>>, vector<32x64xf32>
    %cst = arith.constant dense<0.000000e+00> : vector<256x64xf32>
    %2 = tpu.matmul %0, %1, %cst {dimension_numbers = #tpu.dot_dimension_numbers<[1], [0], [0], [1], [0, 0, 1, 1], [], []>} : vector<256x32xf32>, vector<32x64xf32>, vector<256x64xf32> -> vector<256x64xf32>
    %c0_3 = arith.constant 0 : index
    %c0_4 = arith.constant 0 : index
    %3 = vector.load %arg3[%c0_3, %c0_4] : memref<1x64xf32, #tpu.memory_space<vmem>>, vector<1x64xf32>
    %4 = vector.broadcast %3 : vector<1x64xf32> to vector<256x64xf32>
    %5 = arith.addf %2, %4 : vector<256x64xf32>
    %c0_5 = arith.constant 0 : index
    %c0_6 = arith.constant 0 : index
    %6 = vector.load %arg4[%c0_5, %c0_6] : memref<256x64xf32, #tpu.memory_space<vmem>>, vector<256x64xf32>
    tpu.vector_store %arg4[%c0_5, %c0_6], %5 {strides = array<i32>} : memref<256x64xf32, #tpu.memory_space<vmem>>, vector<256x64xf32>,
    return
  }
  func.func @transform_0(%arg0: i32) -> (i32, i32) {
    %c0_i32 = arith.constant 0 : i32
    %c0_i32_0 = arith.constant 0 : i32
    return %arg0, %c0_i32 : i32, i32
  }
  func.func @transform_1(%arg0: i32) -> (i32, i32) {
    %c0_i32 = arith.constant 0 : i32
    %c0_i32_0 = arith.constant 0 : i32
    %c0_i32_1 = arith.constant 0 : i32
    return %c0_i32, %c0_i32_0 : i32, i32
  }
  func.func @transform_2(%arg0: i32) -> (i32, i32) {
    %c0_i32 = arith.constant 0 : i32
    %c0_i32_0 = arith.constant 0 : i32
    %c0_i32_1 = arith.constant 0 : i32
    return %c0_i32, %c0_i32_0 : i32, i32
  }
  func.func @transform_3(%arg0: i32) -> (i32, i32) {
    %c0_i32 = arith.constant 0 : i32
    %c0_i32_0 = arith.constant 0 : i32
    return %arg0, %c0_i32 : i32, i32
  }
}

module attributes {stable_mosaic.version = 11 : i64} {
  func.func @_split_linear_kernel(%arg0: i32, %arg1: memref<256x32xf32, #tpu.memory_space<vmem>>, %arg2: memref<32x64xf32, #tpu.memory_space<vmem>>, %arg3: memref<1x64xf32, #tpu.memory_space<vmem>>, %arg4: memref<256x64xf32, #tpu.memory_space<vmem>>) attributes {dimension_semantics = [#tpu.dimension_semantics<parallel>], iteration_bounds = array<i64: 1>, scalar_prefetch = 0 : i64, scratch_operands = 0 : i64, tpu.core_type = #tpu.core_type<tc>, window_params = [{transform_indices = @transform_0, window_bounds = array<i64: 256, 32>}, {pipeline_mode = #tpu.pipeline_mode<synchronous>, transform_indices = @transform_1, window_bounds = array<i64: 32, 64>}, {pipeline_mode = #tpu.pipeline_mode<synchronous>, transform_indices = @transform_2, window_bounds = array<i64: 1, 64>}, {transform_indices = @transform_3, window_bounds = array<i64: 256, 64>}]} {
    %c0 = arith.constant 0 : index
    %c0_0 = arith.constant 0 : index
    %0 = vector.load %arg1[%c0, %c0_0] : memref<256x32xf32, #tpu.memory_space<vmem>>, vector<256x32xf32>
    %c0_1 = arith.constant 0 : index
    %c0_2 = arith.constant 0 : index
    %1 = vector.load %arg2[%c0_1, %c0_2] : memref<32x64xf32, #tpu.memory_space<vmem>>, vector<32x64xf32>
    %cst = arith.constant dense<0.000000e+00> : vector<256x64xf32>
    %2 = tpu.matmul %0, %1, %cst {dimension_numbers = #tpu.dot_dimension_numbers<[1], [0], [0], [1], [0, 0, 1, 1], [], []>} : vector<256x32xf32>, vector<32x64xf32>, vector<256x64xf32> -> vector<256x64xf32>
    %c0_3 = arith.constant 0 : index
    %c0_4 = arith.constant 0 : index
    %3 = vector.load %arg3[%c0_3, %c0_4] : memref<1x64xf32, #tpu.memory_space<vmem>>, vector<1x64xf32>
    %4 = vector.broadcast %3 : vector<1x64xf32> to vector<256x64xf32>
    %5 = arith.addf %2, %4 : vector<256x64xf32>
    %c0_5 = arith.constant 0 : index
    %c0_6 = arith.constant 0 : index
    %6 = vector.load %arg4[%c0_5, %c0_6] : memref<256x64xf32, #tpu.memory_space<vmem>>, vector<256x64xf32>
    tpu.vector_store %arg4[%c0_5, %c0_6], %5 {strides = array<i32>} : memref<256x64xf32, #tpu.memory_space<vmem>>, vector<256x64xf32>,
    return
  }
  func.func @transform_0(%arg0: i32) -> (i32, i32) {
    %c0_i32 = arith.constant 0 : i32
    %c0_i32_0 = arith.constant 0 : i32
    return %arg0, %c0_i32 : i32, i32
  }
  func.func @transform_1(%arg0: i32) -> (i32, i32) {
    %c0_i32 = arith.constant 0 : i32
    %c0_i32_0 = arith.constant 0 : i32
    %c0_i32_1 = arith.constant 0 : i32
    return %c0_i32, %c0_i32_0 : i32, i32
  }
  func.func @transform_2(%arg0: i32) -> (i32, i32) {
    %c0_i32 = arith.constant 0 : i32
    %c0_i32_0 = arith.constant 0 : i32
    %c0_i32_1 = arith.constant 0 : i32
    return %c0_i32, %c0_i32_0 : i32, i32
  }
  func.func @transform_3(%arg0: i32) -> (i32, i32) {
    %c0_i32 = arith.constant 0 : i32
    %c0_i32_0 = arith.constant 0 : i32
    return %arg0, %c0_i32 : i32, i32
  }
}

</mosaic_0001>

<bundles_post_ra>
// kernel: tpu_custom_call.1
= control target key start
LH: loop header
LB: loop body
LE: loop exit
PB: predicated region body
PF: predicated region fallthrough
CT: control target
= control target key end

     0   :  { %vm57_vm0 = vcmask 261120   ;;  %vm379_vm1 = vcmask 523264   ;;  %s878_s1 = inlined_call_operand.vmem [shape: f32[32,64], index: 1, kind: input, shape index: {}]   ;;  %s879_s0 = inlined_call_operand.vmem [shape: f32[256,32], index: 0, kind: input, shape index: {}]   ;;  %s880_s2 = inlined_call_operand.vmem [shape: f32[1,64], index: 2, kind: input, shape index: {}]   ;;  %s881_s3 = inlined_call_operand.vmem [shape: f32[256,64], index: 3, kind: output, shape index: {}]  }
   0x1   :  { %v46_v0 = vld [vmem:[%s878_s1] sm:$0xff]  ;;  %v47_v1 = vld [vmem:[%s878_s1 + $0x8] sm:$0xff]  ;;  %v48_v2 = vld [vmem:[%s878_s1 + $0x10] sm:$0xff] }
   0x2   :  { %v541_v3 = vpack.c.bf16 %v47_v1, %v46_v0  ;;  %v49_v4 = vld [vmem:[%s878_s1 + $0x18] sm:$0xff]  ;;  %v14_v5 = vld [vmem:[%s879_s0] sm:$0xff]  ;;  %v15_v8 = vld [vmem:[%s879_s0 + $0x8] sm:$0xff] }
   0x3   :  { %v30_v6 = vld [vmem:[%s879_s0 + $0x80] sm:$0xff]  ;;  %v545_v7 = vpack.c.bf16 %v49_v4, %v48_v2  ;;  %493 = vmatprep.mubr.msk.f32.mxu0 %vm57_vm0, %v14_v5  ;;  %v31_v9 = vld [vmem:[%s879_s0 + $0x88] sm:$0xff]  ;;  %v16_v10 = vld [vmem:[%s879_s0 + $0x10] sm:$0xff] }
   0x4   :  { %517 = vmatprep.mubr.msk.f32.mxu1 %vm57_vm0, %v30_v6  ;;  %542 = vmatprep.subr.bf16.mxu0 %v541_v3  ;;  %v32_v11 = vld [vmem:[%s879_s0 + $0x90] sm:$0xff]  ;;  %v17_v12 = vld [vmem:[%s879_s0 + $0x18] sm:$0xff]  ;;  %v18_v14 = vld [vmem:[%s879_s0 + $0x20] sm:$0xff] }
   0x5   :  { %549 = vmatprep.subr.bf16.mxu1 %v541_v3  ;;  %544 = vmatpush3.bf16.msra.mxu0 %v541_v3  ;;  %v33_v13 = vld [vmem:[%s879_s0 + $0x98] sm:$0xff]  ;;  %v34_v15 = vld [vmem:[%s879_s0 + $0xa0] sm:$0xff]  ;;  %v19_v16 = vld [vmem:[%s879_s0 + $0x28] sm:$0xff] }
   0x6   :  { %551 = vmatpush3.bf16.msra.mxu1 %v541_v3  ;;  %546 = vmatprep.subr.bf16.mxu0 %v545_v7  ;;  %v35_v17 = vld [vmem:[%s879_s0 + $0xa8] sm:$0xff]  ;;  %v20_v18 = vld [vmem:[%s879_s0 + $0x30] sm:$0xff]  ;;  %v21_v20 = vld [vmem:[%s879_s0 + $0x38] sm:$0xff] }
   0x7   :  { %550 = vmatprep.subr.bf16.mxu1 %v545_v7  ;;  %v36_v19 = vld [vmem:[%s879_s0 + $0xb0] sm:$0xff]  ;;  %v37_v21 = vld [vmem:[%s879_s0 + $0xb8] sm:$0xff]  ;;  %v22_v22 = vld [vmem:[%s879_s0 + $0x40] sm:$0xff] }
   0x8   :  { %v38_v23 = vld [vmem:[%s879_s0 + $0xc0] sm:$0xff]  ;;  %v23_v24 = vld [vmem:[%s879_s0 + $0x48] sm:$0xff]  ;;  %v24_v26 = vld [vmem:[%s879_s0 + $0x50] sm:$0xff] }
   0x9   :  { %548 = vmatpush3.bf16.msra.mxu0 %v545_v7  ;;  %v39_v25 = vld [vmem:[%s879_s0 + $0xc8] sm:$0xff]  ;;  %v40_v27 = vld [vmem:[%s879_s0 + $0xd0] sm:$0xff]  ;;  %v25_v28 = vld [vmem:[%s879_s0 + $0x58] sm:$0xff] }
   0xa   :  { %552 = vmatpush3.bf16.msra.mxu1 %v545_v7  ;;  %v41_v29 = vld [vmem:[%s879_s0 + $0xd8] sm:$0xff]  ;;  %v26_v30 = vld [vmem:[%s879_s0 + $0x60] sm:$0xff]  ;;  %v27_v32 = vld [vmem:[%s879_s0 + $0x68] sm:$0xff] }
   0xb   :  { %v42_v31 = vld [vmem:[%s879_s0 + $0xe0] sm:$0xff]  ;;  %v43_v33 = vld [vmem:[%s879_s0 + $0xe8] sm:$0xff]  ;;  %v28_v34 = vld [vmem:[%s879_s0 + $0x70] sm:$0xff] }
   0xc   :  { %494 = vmatmul.mubr.msk.f32.vlgmr.msra.gmra.mrb[0].mxu0 %vm57_vm0, %v15_v8  ;;  %v44_v35 = vld [vmem:[%s879_s0 + $0xf0] sm:$0xff]  ;;  %v29_v36 = vld [vmem:[%s879_s0 + $0x78] sm:$0xff]  ;;  %v716_v38 = vld [vmem:[%s880_s2] ss:$0 sm:$0xff] }
   0xd   :  { %518 = vmatmul.mubr.msk.f32.vlgmr.msra.gmra.mrb[0].mxu1 %vm57_vm0, %v31_v9  ;;  %496 = vmatprep.mubr.msk.f32.mxu0 %vm57_vm0, %v16_v10  ;;  %v45_v37 = vld [vmem:[%s879_s0 + $0xf8] sm:$0xff] }
   0xe   :  { %520 = vmatprep.mubr.msk.f32.mxu1 %vm57_vm0, %v32_v11 }
  0x10   :  { %497 = vmatmul.mubr.msk.f32.gmra.mrb[2].mxu0 %vm57_vm0, %v17_v12 }
  0x11   :  { %521 = vmatmul.mubr.msk.f32.gmra.mrb[2].mxu1 %vm57_vm0, %v33_v13  ;;  %499 = vmatprep.mubr.msk.f32.mxu0 %vm57_vm0, %v18_v14 }
  0x12   :  { %523 = vmatprep.mubr.msk.f32.mxu1 %vm57_vm0, %v34_v15 }
  0x14   :  { %500 = vmatmul.mubr.msk.f32.gmra.mrb[4].mxu0 %vm57_vm0, %v19_v16 }
  0x15   :  { %524 = vmatmul.mubr.msk.f32.gmra.mrb[4].mxu1 %vm57_vm0, %v35_v17  ;;  %502 = vmatprep.mubr.msk.f32.mxu0 %vm57_vm0, %v20_v18 }
  0x16   :  { %526 = vmatprep.mubr.msk.f32.mxu1 %vm57_vm0, %v36_v19 }
  0x18   :  { %503 = vmatmul.mubr.msk.f32.gmra.mrb[6].mxu0 %vm57_vm0, %v21_v20 }
  0x19   :  { %527 = vmatmul.mubr.msk.f32.gmra.mrb[6].mxu1 %vm57_vm0, %v37_v21  ;;  %505 = vmatprep.mubr.msk.f32.mxu0 %vm57_vm0, %v22_v22 }
  0x1a   :  { %529 = vmatprep.mubr.msk.f32.mxu1 %vm57_vm0, %v38_v23 }
  0x1c   :  { %506 = vmatmul.mubr.msk.f32.gmra.mrb[8].mxu0 %vm57_vm0, %v23_v24 }
  0x1d   :  { %530 = vmatmul.mubr.msk.f32.gmra.mrb[8].mxu1 %vm57_vm0, %v39_v25  ;;  %508 = vmatprep.mubr.msk.f32.mxu0 %vm57_vm0, %v24_v26 }
  0x1e   :  { %532 = vmatprep.mubr.msk.f32.mxu1 %vm57_vm0, %v40_v27 }
  0x20   :  { %509 = vmatmul.mubr.msk.f32.gmra.mrb[10].mxu0 %vm57_vm0, %v25_v28 }
  0x21   :  { %533 = vmatmul.mubr.msk.f32.gmra.mrb[10].mxu1 %vm57_vm0, %v41_v29  ;;  %511 = vmatprep.mubr.msk.f32.mxu0 %vm57_vm0, %v26_v30 }
  0x22   :  { %535 = vmatprep.mubr.msk.f32.mxu1 %vm57_vm0, %v42_v31 }
  0x24   :  { %512 = vmatmul.mubr.msk.f32.gmra.mrb[12].mxu0 %vm57_vm0, %v27_v32 }
  0x25   :  { %536 = vmatmul.mubr.msk.f32.gmra.mrb[12].mxu1 %vm57_vm0, %v43_v33  ;;  %514 = vmatprep.mubr.msk.f32.mxu0 %vm57_vm0, %v28_v34 }
  0x26   :  { %538 = vmatprep.mubr.msk.f32.mxu1 %vm57_vm0, %v44_v35 }
  0x28   :  { %515 = vmatmul.mubr.msk.f32.gmra.mrb[14].mxu0 %vm57_vm0, %v29_v36 }
  0x29   :  { %539 = vmatmul.mubr.msk.f32.gmra.mrb[14].mxu1 %vm57_vm0, %v45_v37 }
  0xdf   :  { %v495_v39 = vpop.f32.mrb[0].mxu0 }
  0xe0   :  { %v519_v40 = vpop.f32.mrb[0].mxu1  ;;  %v226_v41 = vadd.f32 %v495_v39, %v716_v38  ;;  %v220_v43 = vpop.f32.mrb[1].mxu0 }
  0xe1   :  { %v306_v42 = vadd.f32 %v519_v40, %v716_v38  ;;  %v300_v44 = vpop.f32.mrb[1].mxu1  ;;  %v221_v45 = vadd.f32 %v716_v38, %v220_v43 }
  0xe2   :  { %v301_v46 = vadd.f32 %v716_v38, %v300_v44  ;;  %381 = vst.msk [vmem:[%s881_s3 + $0x8] sm:$0xff] %vm379_vm1, %v226_v41 }
  0xe3   :  { %397 = vst.msk [vmem:[%s881_s3 + $0x88] sm:$0xff] %vm379_vm1, %v306_v42  ;;  %380 = vst.msk [vmem:[%s881_s3] sm:$0xff] %vm379_vm1, %v221_v45  ;;  %v498_v47 = vpop.f32.mrb[2].mxu0 }
  0xe4   :  { %396 = vst.msk [vmem:[%s881_s3 + $0x80] sm:$0xff] %vm379_vm1, %v301_v46  ;;  %v522_v48 = vpop.f32.mrb[2].mxu1  ;;  %v236_v49 = vadd.f32 %v498_v47, %v716_v38  ;;  %v230_v51 = vpop.f32.mrb[3].mxu0 }
  0xe5   :  { %v316_v50 = vadd.f32 %v522_v48, %v716_v38  ;;  %v310_v52 = vpop.f32.mrb[3].mxu1  ;;  %v231_v53 = vadd.f32 %v716_v38, %v230_v51 }
  0xe6   :  { %v311_v54 = vadd.f32 %v716_v38, %v310_v52  ;;  %383 = vst.msk [vmem:[%s881_s3 + $0x18] sm:$0xff] %vm379_vm1, %v236_v49 }
  0xe7   :  { %399 = vst.msk [vmem:[%s881_s3 + $0x98] sm:$0xff] %vm379_vm1, %v316_v50  ;;  %382 = vst.msk [vmem:[%s881_s3 + $0x10] sm:$0xff] %vm379_vm1, %v231_v53  ;;  %v501_v55 = vpop.f32.mrb[4].mxu0 }
  0xe8   :  { %398 = vst.msk [vmem:[%s881_s3 + $0x90] sm:$0xff] %vm379_vm1, %v311_v54  ;;  %v525_v56 = vpop.f32.mrb[4].mxu1  ;;  %v246_v57 = vadd.f32 %v501_v55, %v716_v38  ;;  %v240_v59 = vpop.f32.mrb[5].mxu0 }
  0xe9   :  { %v326_v58 = vadd.f32 %v525_v56, %v716_v38  ;;  %v320_v60 = vpop.f32.mrb[5].mxu1  ;;  %v241_v61 = vadd.f32 %v716_v38, %v240_v59 }
  0xea   :  { %v321_v62 = vadd.f32 %v716_v38, %v320_v60  ;;  %385 = vst.msk [vmem:[%s881_s3 + $0x28] sm:$0xff] %vm379_vm1, %v246_v57 }
  0xeb   :  { %401 = vst.msk [vmem:[%s881_s3 + $0xa8] sm:$0xff] %vm379_vm1, %v326_v58  ;;  %384 = vst.msk [vmem:[%s881_s3 + $0x20] sm:$0xff] %vm379_vm1, %v241_v61  ;;  %v504_v63 = vpop.f32.mrb[6].mxu0 }
  0xec   :  { %400 = vst.msk [vmem:[%s881_s3 + $0xa0] sm:$0xff] %vm379_vm1, %v321_v62  ;;  %v528_v0 = vpop.f32.mrb[6].mxu1  ;;  %v256_v1 = vadd.f32 %v504_v63, %v716_v38  ;;  %v250_v3 = vpop.f32.mrb[7].mxu0 }
  0xed   :  { %v336_v2 = vadd.f32 %v528_v0, %v716_v38  ;;  %v330_v4 = vpop.f32.mrb[7].mxu1  ;;  %v251_v5 = vadd.f32 %v716_v38, %v250_v3 }
  0xee   :  { %v331_v6 = vadd.f32 %v716_v38, %v330_v4  ;;  %387 = vst.msk [vmem:[%s881_s3 + $0x38] sm:$0xff] %vm379_vm1, %v256_v1 }
  0xef   :  { %403 = vst.msk [vmem:[%s881_s3 + $0xb8] sm:$0xff] %vm379_vm1, %v336_v2  ;;  %386 = vst.msk [vmem:[%s881_s3 + $0x30] sm:$0xff] %vm379_vm1, %v251_v5  ;;  %v507_v7 = vpop.f32.mrb[8].mxu0 }
  0xf0   :  { %402 = vst.msk [vmem:[%s881_s3 + $0xb0] sm:$0xff] %vm379_vm1, %v331_v6  ;;  %v531_v8 = vpop.f32.mrb[8].mxu1  ;;  %v266_v9 = vadd.f32 %v507_v7, %v716_v38  ;;  %v260_v11 = vpop.f32.mrb[9].mxu0 }
  0xf1   :  { %v346_v10 = vadd.f32 %v531_v8, %v716_v38  ;;  %v340_v12 = vpop.f32.mrb[9].mxu1  ;;  %v261_v13 = vadd.f32 %v716_v38, %v260_v11 }
  0xf2   :  { %v341_v14 = vadd.f32 %v716_v38, %v340_v12  ;;  %389 = vst.msk [vmem:[%s881_s3 + $0x48] sm:$0xff] %vm379_vm1, %v266_v9 }
  0xf3   :  { %405 = vst.msk [vmem:[%s881_s3 + $0xc8] sm:$0xff] %vm379_vm1, %v346_v10  ;;  %388 = vst.msk [vmem:[%s881_s3 + $0x40] sm:$0xff] %vm379_vm1, %v261_v13  ;;  %v510_v15 = vpop.f32.mrb[10].mxu0 }
  0xf4   :  { %404 = vst.msk [vmem:[%s881_s3 + $0xc0] sm:$0xff] %vm379_vm1, %v341_v14  ;;  %v534_v16 = vpop.f32.mrb[10].mxu1  ;;  %v276_v17 = vadd.f32 %v510_v15, %v716_v38  ;;  %v270_v19 = vpop.f32.mrb[11].mxu0 }
  0xf5   :  { %v356_v18 = vadd.f32 %v534_v16, %v716_v38  ;;  %v350_v20 = vpop.f32.mrb[11].mxu1  ;;  %v271_v21 = vadd.f32 %v716_v38, %v270_v19 }
  0xf6   :  { %v351_v22 = vadd.f32 %v716_v38, %v350_v20  ;;  %391 = vst.msk [vmem:[%s881_s3 + $0x58] sm:$0xff] %vm379_vm1, %v276_v17 }
  0xf7   :  { %407 = vst.msk [vmem:[%s881_s3 + $0xd8] sm:$0xff] %vm379_vm1, %v356_v18  ;;  %390 = vst.msk [vmem:[%s881_s3 + $0x50] sm:$0xff] %vm379_vm1, %v271_v21  ;;  %v513_v23 = vpop.f32.mrb[12].mxu0 }
  0xf8   :  { %406 = vst.msk [vmem:[%s881_s3 + $0xd0] sm:$0xff] %vm379_vm1, %v351_v22  ;;  %v537_v24 = vpop.f32.mrb[12].mxu1  ;;  %v286_v25 = vadd.f32 %v513_v23, %v716_v38  ;;  %v280_v27 = vpop.f32.mrb[13].mxu0 }
  0xf9   :  { %v366_v26 = vadd.f32 %v537_v24, %v716_v38  ;;  %v360_v28 = vpop.f32.mrb[13].mxu1  ;;  %v281_v29 = vadd.f32 %v716_v38, %v280_v27 }
  0xfa   :  { %v361_v30 = vadd.f32 %v716_v38, %v360_v28  ;;  %393 = vst.msk [vmem:[%s881_s3 + $0x68] sm:$0xff] %vm379_vm1, %v286_v25 }
  0xfb   :  { %409 = vst.msk [vmem:[%s881_s3 + $0xe8] sm:$0xff] %vm379_vm1, %v366_v26  ;;  %392 = vst.msk [vmem:[%s881_s3 + $0x60] sm:$0xff] %vm379_vm1, %v281_v29  ;;  %v516_v31 = vpop.f32.mrb[14].mxu0 }
  0xfc   :  { %408 = vst.msk [vmem:[%s881_s3 + $0xe0] sm:$0xff] %vm379_vm1, %v361_v30  ;;  %v540_v32 = vpop.f32.mrb[14].mxu1  ;;  %v296_v33 = vadd.f32 %v516_v31, %v716_v38  ;;  %v290_v35 = vpop.f32.mrb[15].mxu0 }
  0xfd   :  { %v376_v34 = vadd.f32 %v540_v32, %v716_v38  ;;  %v370_v36 = vpop.f32.mrb[15].mxu1  ;;  %v291_v37 = vadd.f32 %v716_v38, %v290_v35 }
  0xfe   :  { %v371_v39 = vadd.f32 %v716_v38, %v370_v36  ;;  %395 = vst.msk [vmem:[%s881_s3 + $0x78] sm:$0xff] %vm379_vm1, %v296_v33 }
  0xff   :  { %411 = vst.msk [vmem:[%s881_s3 + $0xf8] sm:$0xff] %vm379_vm1, %v376_v34  ;;  %394 = vst.msk [vmem:[%s881_s3 + $0x70] sm:$0xff] %vm379_vm1, %v291_v37 }
 0x100   :  { %410 = vst.msk [vmem:[%s881_s3 + $0xf0] sm:$0xff] %vm379_vm1, %v371_v39 }

// kernel: tpu_custom_call.1
= control target key start
LH: loop header
LB: loop body
LE: loop exit
PB: predicated region body
PF: predicated region fallthrough
CT: control target
= control target key end

     0   :  { %vm57_vm0 = vcmask 261120   ;;  %vm379_vm1 = vcmask 523264   ;;  %s878_s1 = inlined_call_operand.vmem [shape: f32[32,64], index: 1, kind: input, shape index: {}]   ;;  %s879_s0 = inlined_call_operand.vmem [shape: f32[256,32], index: 0, kind: input, shape index: {}]   ;;  %s880_s2 = inlined_call_operand.vmem [shape: f32[1,64], index: 2, kind: input, shape index: {}]   ;;  %s881_s3 = inlined_call_operand.vmem [shape: f32[256,64], index: 3, kind: output, shape index: {}]  }
   0x1   :  { %v46_v0 = vld [vmem:[%s878_s1] sm:$0xff]  ;;  %v47_v1 = vld [vmem:[%s878_s1 + $0x8] sm:$0xff]  ;;  %v48_v2 = vld [vmem:[%s878_s1 + $0x10] sm:$0xff] }
   0x2   :  { %v541_v3 = vpack.c.bf16 %v47_v1, %v46_v0  ;;  %v49_v4 = vld [vmem:[%s878_s1 + $0x18] sm:$0xff]  ;;  %v14_v5 = vld [vmem:[%s879_s0] sm:$0xff]  ;;  %v15_v8 = vld [vmem:[%s879_s0 + $0x8] sm:$0xff] }
   0x3   :  { %v30_v6 = vld [vmem:[%s879_s0 + $0x80] sm:$0xff]  ;;  %v545_v7 = vpack.c.bf16 %v49_v4, %v48_v2  ;;  %493 = vmatprep.mubr.msk.f32.mxu0 %vm57_vm0, %v14_v5  ;;  %v31_v9 = vld [vmem:[%s879_s0 + $0x88] sm:$0xff]  ;;  %v16_v10 = vld [vmem:[%s879_s0 + $0x10] sm:$0xff] }
   0x4   :  { %517 = vmatprep.mubr.msk.f32.mxu1 %vm57_vm0, %v30_v6  ;;  %542 = vmatprep.subr.bf16.mxu0 %v541_v3  ;;  %v32_v11 = vld [vmem:[%s879_s0 + $0x90] sm:$0xff]  ;;  %v17_v12 = vld [vmem:[%s879_s0 + $0x18] sm:$0xff]  ;;  %v18_v14 = vld [vmem:[%s879_s0 + $0x20] sm:$0xff] }
   0x5   :  { %549 = vmatprep.subr.bf16.mxu1 %v541_v3  ;;  %544 = vmatpush3.bf16.msra.mxu0 %v541_v3  ;;  %v33_v13 = vld [vmem:[%s879_s0 + $0x98] sm:$0xff]  ;;  %v34_v15 = vld [vmem:[%s879_s0 + $0xa0] sm:$0xff]  ;;  %v19_v16 = vld [vmem:[%s879_s0 + $0x28] sm:$0xff] }
   0x6   :  { %551 = vmatpush3.bf16.msra.mxu1 %v541_v3  ;;  %546 = vmatprep.subr.bf16.mxu0 %v545_v7  ;;  %v35_v17 = vld [vmem:[%s879_s0 + $0xa8] sm:$0xff]  ;;  %v20_v18 = vld [vmem:[%s879_s0 + $0x30] sm:$0xff]  ;;  %v21_v20 = vld [vmem:[%s879_s0 + $0x38] sm:$0xff] }
   0x7   :  { %550 = vmatprep.subr.bf16.mxu1 %v545_v7  ;;  %v36_v19 = vld [vmem:[%s879_s0 + $0xb0] sm:$0xff]  ;;  %v37_v21 = vld [vmem:[%s879_s0 + $0xb8] sm:$0xff]  ;;  %v22_v22 = vld [vmem:[%s879_s0 + $0x40] sm:$0xff] }
   0x8   :  { %v38_v23 = vld [vmem:[%s879_s0 + $0xc0] sm:$0xff]  ;;  %v23_v24 = vld [vmem:[%s879_s0 + $0x48] sm:$0xff]  ;;  %v24_v26 = vld [vmem:[%s879_s0 + $0x50] sm:$0xff] }
   0x9   :  { %548 = vmatpush3.bf16.msra.mxu0 %v545_v7  ;;  %v39_v25 = vld [vmem:[%s879_s0 + $0xc8] sm:$0xff]  ;;  %v40_v27 = vld [vmem:[%s879_s0 + $0xd0] sm:$0xff]  ;;  %v25_v28 = vld [vmem:[%s879_s0 + $0x58] sm:$0xff] }
   0xa   :  { %552 = vmatpush3.bf16.msra.mxu1 %v545_v7  ;;  %v41_v29 = vld [vmem:[%s879_s0 + $0xd8] sm:$0xff]  ;;  %v26_v30 = vld [vmem:[%s879_s0 + $0x60] sm:$0xff]  ;;  %v27_v32 = vld [vmem:[%s879_s0 + $0x68] sm:$0xff] }
   0xb   :  { %v42_v31 = vld [vmem:[%s879_s0 + $0xe0] sm:$0xff]  ;;  %v43_v33 = vld [vmem:[%s879_s0 + $0xe8] sm:$0xff]  ;;  %v28_v34 = vld [vmem:[%s879_s0 + $0x70] sm:$0xff] }
   0xc   :  { %494 = vmatmul.mubr.msk.f32.vlgmr.msra.gmra.mrb[0].mxu0 %vm57_vm0, %v15_v8  ;;  %v44_v35 = vld [vmem:[%s879_s0 + $0xf0] sm:$0xff]  ;;  %v29_v36 = vld [vmem:[%s879_s0 + $0x78] sm:$0xff]  ;;  %v716_v38 = vld [vmem:[%s880_s2] ss:$0 sm:$0xff] }
   0xd   :  { %518 = vmatmul.mubr.msk.f32.vlgmr.msra.gmra.mrb[0].mxu1 %vm57_vm0, %v31_v9  ;;  %496 = vmatprep.mubr.msk.f32.mxu0 %vm57_vm0, %v16_v10  ;;  %v45_v37 = vld [vmem:[%s879_s0 + $0xf8] sm:$0xff] }
   0xe   :  { %520 = vmatprep.mubr.msk.f32.mxu1 %vm57_vm0, %v32_v11 }
  0x10   :  { %497 = vmatmul.mubr.msk.f32.gmra.mrb[2].mxu0 %vm57_vm0, %v17_v12 }
  0x11   :  { %521 = vmatmul.mubr.msk.f32.gmra.mrb[2].mxu1 %vm57_vm0, %v33_v13  ;;  %499 = vmatprep.mubr.msk.f32.mxu0 %vm57_vm0, %v18_v14 }
  0x12   :  { %523 = vmatprep.mubr.msk.f32.mxu1 %vm57_vm0, %v34_v15 }
  0x14   :  { %500 = vmatmul.mubr.msk.f32.gmra.mrb[4].mxu0 %vm57_vm0, %v19_v16 }
  0x15   :  { %524 = vmatmul.mubr.msk.f32.gmra.mrb[4].mxu1 %vm57_vm0, %v35_v17  ;;  %502 = vmatprep.mubr.msk.f32.mxu0 %vm57_vm0, %v20_v18 }
  0x16   :  { %526 = vmatprep.mubr.msk.f32.mxu1 %vm57_vm0, %v36_v19 }
  0x18   :  { %503 = vmatmul.mubr.msk.f32.gmra.mrb[6].mxu0 %vm57_vm0, %v21_v20 }
  0x19   :  { %527 = vmatmul.mubr.msk.f32.gmra.mrb[6].mxu1 %vm57_vm0, %v37_v21  ;;  %505 = vmatprep.mubr.msk.f32.mxu0 %vm57_vm0, %v22_v22 }
  0x1a   :  { %529 = vmatprep.mubr.msk.f32.mxu1 %vm57_vm0, %v38_v23 }
  0x1c   :  { %506 = vmatmul.mubr.msk.f32.gmra.mrb[8].mxu0 %vm57_vm0, %v23_v24 }
  0x1d   :  { %530 = vmatmul.mubr.msk.f32.gmra.mrb[8].mxu1 %vm57_vm0, %v39_v25  ;;  %508 = vmatprep.mubr.msk.f32.mxu0 %vm57_vm0, %v24_v26 }
  0x1e   :  { %532 = vmatprep.mubr.msk.f32.mxu1 %vm57_vm0, %v40_v27 }
  0x20   :  { %509 = vmatmul.mubr.msk.f32.gmra.mrb[10].mxu0 %vm57_vm0, %v25_v28 }
  0x21   :  { %533 = vmatmul.mubr.msk.f32.gmra.mrb[10].mxu1 %vm57_vm0, %v41_v29  ;;  %511 = vmatprep.mubr.msk.f32.mxu0 %vm57_vm0, %v26_v30 }
  0x22   :  { %535 = vmatprep.mubr.msk.f32.mxu1 %vm57_vm0, %v42_v31 }
  0x24   :  { %512 = vmatmul.mubr.msk.f32.gmra.mrb[12].mxu0 %vm57_vm0, %v27_v32 }
  0x25   :  { %536 = vmatmul.mubr.msk.f32.gmra.mrb[12].mxu1 %vm57_vm0, %v43_v33  ;;  %514 = vmatprep.mubr.msk.f32.mxu0 %vm57_vm0, %v28_v34 }
  0x26   :  { %538 = vmatprep.mubr.msk.f32.mxu1 %vm57_vm0, %v44_v35 }
  0x28   :  { %515 = vmatmul.mubr.msk.f32.gmra.mrb[14].mxu0 %vm57_vm0, %v29_v36 }
  0x29   :  { %539 = vmatmul.mubr.msk.f32.gmra.mrb[14].mxu1 %vm57_vm0, %v45_v37 }
  0xdf   :  { %v495_v39 = vpop.f32.mrb[0].mxu0 }
  0xe0   :  { %v519_v40 = vpop.f32.mrb[0].mxu1  ;;  %v226_v41 = vadd.f32 %v495_v39, %v716_v38  ;;  %v220_v43 = vpop.f32.mrb[1].mxu0 }
  0xe1   :  { %v306_v42 = vadd.f32 %v519_v40, %v716_v38  ;;  %v300_v44 = vpop.f32.mrb[1].mxu1  ;;  %v221_v45 = vadd.f32 %v716_v38, %v220_v43 }
  0xe2   :  { %v301_v46 = vadd.f32 %v716_v38, %v300_v44  ;;  %381 = vst.msk [vmem:[%s881_s3 + $0x8] sm:$0xff] %vm379_vm1, %v226_v41 }
  0xe3   :  { %397 = vst.msk [vmem:[%s881_s3 + $0x88] sm:$0xff] %vm379_vm1, %v306_v42  ;;  %380 = vst.msk [vmem:[%s881_s3] sm:$0xff] %vm379_vm1, %v221_v45  ;;  %v498_v47 = vpop.f32.mrb[2].mxu0 }
  0xe4   :  { %396 = vst.msk [vmem:[%s881_s3 + $0x80] sm:$0xff] %vm379_vm1, %v301_v46  ;;  %v522_v48 = vpop.f32.mrb[2].mxu1  ;;  %v236_v49 = vadd.f32 %v498_v47, %v716_v38  ;;  %v230_v51 = vpop.f32.mrb[3].mxu0 }
  0xe5   :  { %v316_v50 = vadd.f32 %v522_v48, %v716_v38  ;;  %v310_v52 = vpop.f32.mrb[3].mxu1  ;;  %v231_v53 = vadd.f32 %v716_v38, %v230_v51 }
  0xe6   :  { %v311_v54 = vadd.f32 %v716_v38, %v310_v52  ;;  %383 = vst.msk [vmem:[%s881_s3 + $0x18] sm:$0xff] %vm379_vm1, %v236_v49 }
  0xe7   :  { %399 = vst.msk [vmem:[%s881_s3 + $0x98] sm:$0xff] %vm379_vm1, %v316_v50  ;;  %382 = vst.msk [vmem:[%s881_s3 + $0x10] sm:$0xff] %vm379_vm1, %v231_v53  ;;  %v501_v55 = vpop.f32.mrb[4].mxu0 }
  0xe8   :  { %398 = vst.msk [vmem:[%s881_s3 + $0x90] sm:$0xff] %vm379_vm1, %v311_v54  ;;  %v525_v56 = vpop.f32.mrb[4].mxu1  ;;  %v246_v57 = vadd.f32 %v501_v55, %v716_v38  ;;  %v240_v59 = vpop.f32.mrb[5].mxu0 }
  0xe9   :  { %v326_v58 = vadd.f32 %v525_v56, %v716_v38  ;;  %v320_v60 = vpop.f32.mrb[5].mxu1  ;;  %v241_v61 = vadd.f32 %v716_v38, %v240_v59 }
  0xea   :  { %v321_v62 = vadd.f32 %v716_v38, %v320_v60  ;;  %385 = vst.msk [vmem:[%s881_s3 + $0x28] sm:$0xff] %vm379_vm1, %v246_v57 }
  0xeb   :  { %401 = vst.msk [vmem:[%s881_s3 + $0xa8] sm:$0xff] %vm379_vm1, %v326_v58  ;;  %384 = vst.msk [vmem:[%s881_s3 + $0x20] sm:$0xff] %vm379_vm1, %v241_v61  ;;  %v504_v63 = vpop.f32.mrb[6].mxu0 }
  0xec   :  { %400 = vst.msk [vmem:[%s881_s3 + $0xa0] sm:$0xff] %vm379_vm1, %v321_v62  ;;  %v528_v0 = vpop.f32.mrb[6].mxu1  ;;  %v256_v1 = vadd.f32 %v504_v63, %v716_v38  ;;  %v250_v3 = vpop.f32.mrb[7].mxu0 }
  0xed   :  { %v336_v2 = vadd.f32 %v528_v0, %v716_v38  ;;  %v330_v4 = vpop.f32.mrb[7].mxu1  ;;  %v251_v5 = vadd.f32 %v716_v38, %v250_v3 }
  0xee   :  { %v331_v6 = vadd.f32 %v716_v38, %v330_v4  ;;  %387 = vst.msk [vmem:[%s881_s3 + $0x38] sm:$0xff] %vm379_vm1, %v256_v1 }
  0xef   :  { %403 = vst.msk [vmem:[%s881_s3 + $0xb8] sm:$0xff] %vm379_vm1, %v336_v2  ;;  %386 = vst.msk [vmem:[%s881_s3 + $0x30] sm:$0xff] %vm379_vm1, %v251_v5  ;;  %v507_v7 = vpop.f32.mrb[8].mxu0 }
  0xf0   :  { %402 = vst.msk [vmem:[%s881_s3 + $0xb0] sm:$0xff] %vm379_vm1, %v331_v6  ;;  %v531_v8 = vpop.f32.mrb[8].mxu1  ;;  %v266_v9 = vadd.f32 %v507_v7, %v716_v38  ;;  %v260_v11 = vpop.f32.mrb[9].mxu0 }
  0xf1   :  { %v346_v10 = vadd.f32 %v531_v8, %v716_v38  ;;  %v340_v12 = vpop.f32.mrb[9].mxu1  ;;  %v261_v13 = vadd.f32 %v716_v38, %v260_v11 }
  0xf2   :  { %v341_v14 = vadd.f32 %v716_v38, %v340_v12  ;;  %389 = vst.msk [vmem:[%s881_s3 + $0x48] sm:$0xff] %vm379_vm1, %v266_v9 }
  0xf3   :  { %405 = vst.msk [vmem:[%s881_s3 + $0xc8] sm:$0xff] %vm379_vm1, %v346_v10  ;;  %388 = vst.msk [vmem:[%s881_s3 + $0x40] sm:$0xff] %vm379_vm1, %v261_v13  ;;  %v510_v15 = vpop.f32.mrb[10].mxu0 }
  0xf4   :  { %404 = vst.msk [vmem:[%s881_s3 + $0xc0] sm:$0xff] %vm379_vm1, %v341_v14  ;;  %v534_v16 = vpop.f32.mrb[10].mxu1  ;;  %v276_v17 = vadd.f32 %v510_v15, %v716_v38  ;;  %v270_v19 = vpop.f32.mrb[11].mxu0 }
  0xf5   :  { %v356_v18 = vadd.f32 %v534_v16, %v716_v38  ;;  %v350_v20 = vpop.f32.mrb[11].mxu1  ;;  %v271_v21 = vadd.f32 %v716_v38, %v270_v19 }
  0xf6   :  { %v351_v22 = vadd.f32 %v716_v38, %v350_v20  ;;  %391 = vst.msk [vmem:[%s881_s3 + $0x58] sm:$0xff] %vm379_vm1, %v276_v17 }
  0xf7   :  { %407 = vst.msk [vmem:[%s881_s3 + $0xd8] sm:$0xff] %vm379_vm1, %v356_v18  ;;  %390 = vst.msk [vmem:[%s881_s3 + $0x50] sm:$0xff] %vm379_vm1, %v271_v21  ;;  %v513_v23 = vpop.f32.mrb[12].mxu0 }
  0xf8   :  { %406 = vst.msk [vmem:[%s881_s3 + $0xd0] sm:$0xff] %vm379_vm1, %v351_v22  ;;  %v537_v24 = vpop.f32.mrb[12].mxu1  ;;  %v286_v25 = vadd.f32 %v513_v23, %v716_v38  ;;  %v280_v27 = vpop.f32.mrb[13].mxu0 }
  0xf9   :  { %v366_v26 = vadd.f32 %v537_v24, %v716_v38  ;;  %v360_v28 = vpop.f32.mrb[13].mxu1  ;;  %v281_v29 = vadd.f32 %v716_v38, %v280_v27 }
  0xfa   :  { %v361_v30 = vadd.f32 %v716_v38, %v360_v28  ;;  %393 = vst.msk [vmem:[%s881_s3 + $0x68] sm:$0xff] %vm379_vm1, %v286_v25 }
  0xfb   :  { %409 = vst.msk [vmem:[%s881_s3 + $0xe8] sm:$0xff] %vm379_vm1, %v366_v26  ;;  %392 = vst.msk [vmem:[%s881_s3 + $0x60] sm:$0xff] %vm379_vm1, %v281_v29  ;;  %v516_v31 = vpop.f32.mrb[14].mxu0 }
  0xfc   :  { %408 = vst.msk [vmem:[%s881_s3 + $0xe0] sm:$0xff] %vm379_vm1, %v361_v30  ;;  %v540_v32 = vpop.f32.mrb[14].mxu1  ;;  %v296_v33 = vadd.f32 %v516_v31, %v716_v38  ;;  %v290_v35 = vpop.f32.mrb[15].mxu0 }
  0xfd   :  { %v376_v34 = vadd.f32 %v540_v32, %v716_v38  ;;  %v370_v36 = vpop.f32.mrb[15].mxu1  ;;  %v291_v37 = vadd.f32 %v716_v38, %v290_v35 }
  0xfe   :  { %v371_v39 = vadd.f32 %v716_v38, %v370_v36  ;;  %395 = vst.msk [vmem:[%s881_s3 + $0x78] sm:$0xff] %vm379_vm1, %v296_v33 }
  0xff   :  { %411 = vst.msk [vmem:[%s881_s3 + $0xf8] sm:$0xff] %vm379_vm1, %v376_v34  ;;  %394 = vst.msk [vmem:[%s881_s3 + $0x70] sm:$0xff] %vm379_vm1, %v291_v37 }
 0x100   :  { %410 = vst.msk [vmem:[%s881_s3 + $0xf0] sm:$0xff] %vm379_vm1, %v371_v39 }

</bundles_post_ra>
